<compile_context>
chip_gen: v7x
topology: tpu7x:2x2x1
jax: 0.10.0
libtpu: 0.0.40
codegen_flags: <defaults>
</compile_context>

<pallas_src>
import functools

import jax
import jax.numpy as jnp
from jax.experimental import pallas as pl
from jax.experimental.pallas import tpu as pltpu


def _round_up(x, m):
    return (x + m - 1) // m * m


def _to_2tuple(x):
    return tuple(x) if isinstance(x, (tuple, list)) else (x, x)


# ----------------------------------------------------------------------------
# Pallas kernel: single-shot matmul + fused bias
#   out[tm, tn] = patches[tm, K] @ w[K, tn] + b[tn]
# (no K grid axis, no accumulator scratch)
# ----------------------------------------------------------------------------
def _patch_embed_matmul_kernel(p_ref, w_ref, b_ref, o_ref):
    acc = jnp.dot(p_ref[...], w_ref[...], preferred_element_type=jnp.float32)
    o_ref[...] = (acc + b_ref[...].astype(jnp.float32)).astype(o_ref.dtype)


def _select_tiles(M, N, lhs_dtype):
    # Sublane grain is dtype dependent: 8 rows/vreg (f32), 16 (bf16), 32 (8-bit).
    itemsize = jnp.dtype(lhs_dtype).itemsize
    sub = {4: 8, 2: 16, 1: 32}.get(itemsize, 8)

    # tm: big, 256-aligned tiles (v6e/v7x MXU rows); 512 exploits v7x VMEM
    # headroom and cuts per-step pipeline overhead.  Small M rounds to the
    # sublane grain; ragged last block is masked by Pallas.
    if M >= 512:
        tm = 512
    elif M >= 256:
        tm = 256
    else:
        tm = _round_up(M, sub)

    # tn: lane-dense output (full vst, no masked partial stores).  Prefer 256
    # (fills a 2x256x256 MXU); 128 also fully feeds v5e's 4x128x128 MXU.
    if N % 256 == 0:
        tn = 256
    elif N % 128 == 0:
        tn = 128
    else:
        tn = N  # full-extent block: legal, stores masked on the lane axis.
    return tm, tn


def _patch_embed_matmul(patches, w2d, bias, out_dtype):
    """(M, K) @ (K, N) + bias[N] -> (M, N), tiled over (M, N) only."""
    M, K = patches.shape
    K2, N = w2d.shape
    assert K == K2 and bias.shape == (N,)

    tm, tn = _select_tiles(M, N, patches.dtype)
    grid = (pl.cdiv(M, tm), pl.cdiv(N, tn))
    b2d = bias.reshape(1, N)

    return pl.pallas_call(
        _patch_embed_matmul_kernel,
        out_shape=jax.ShapeDtypeStruct((M, N), out_dtype),
        grid_spec=pltpu.PrefetchScalarGridSpec(
            num_scalar_prefetch=0,
            grid=grid,
            in_specs=[
                pl.BlockSpec((tm, K), lambda i, j: (i, 0)),   # patches stripe
                pl.BlockSpec((K, tn), lambda i, j: (0, j)),   # weight panel
                pl.BlockSpec((1, tn), lambda i, j: (0, j)),   # bias
            ],
            out_specs=pl.BlockSpec((tm, tn), lambda i, j: (i, j)),
        ),
        compiler_params=pltpu.CompilerParams(
            dimension_semantics=("parallel", "parallel"),
        ),
    )(patches, w2d, b2d)


# ----------------------------------------------------------------------------
# Forward wrapper (patch unfold + Pallas matmul + optional mask resize)
# ----------------------------------------------------------------------------
@functools.partial(jax.jit, static_argnames=("patch_size", "compute_dtype"))
def _patch_embed_tokens(x, weight, bias, patch_size, compute_dtype):
    B, C, H, W = x.shape
    ph, pw = patch_size
    E = weight.shape[0]
    Hp, Wp = H // ph, W // pw
    K = C * ph * pw

    # Unfold non-overlapping patches, flattened in (C, ph, pw) order so the dot
    # matches Conv2d's weight layout exactly.  Kept under this jit (no
    # subsequent pad/slice) so XLA emits a single fused relayout copy.
    # TODO(synk): fold the unfold into the kernel via a 6-D (B,C,Hp,ph,Wp,pw)
    # BlockSpec + in-kernel relayout to save this one extra HBM pass over x.
    patches = x.reshape(B, C, Hp, ph, Wp, pw).transpose(0, 2, 4, 1, 3, 5)
    patches = patches.reshape(B * Hp * Wp, K).astype(compute_dtype)

    w2d = weight.reshape(E, K).T.astype(compute_dtype)          # (K, E)
    bias_f32 = bias.astype(jnp.float32)

    out = _patch_embed_matmul(patches, w2d, bias_f32, out_dtype=x.dtype)
    return out.reshape(B, Hp * Wp, E)


def _nearest_resize_mask(mask, Hp, Wp):
    # Plain-JAX mirror of F.interpolate(mask[None].float(), size=(Hp, Wp))
    # (default 'nearest'), then cast to bool.  Tiny gather; not worth Pallas.
    _, H, W = mask.shape
    ri = jnp.floor(jnp.arange(Hp) * (H / Hp)).astype(jnp.int32)
    ci = jnp.floor(jnp.arange(Wp) * (W / Wp)).astype(jnp.int32)
    return mask[:, ri][:, :, ci].astype(bool)


def patch_embed_forward(x, weight, bias, patch_size, mask=None,
                        compute_dtype=jnp.bfloat16):
    """x: (B, C, H, W); weight: (E, C, ph, pw); bias: (E,).

    Returns (tokens (B, Hp*Wp, E), (Hp, Wp), resized_mask_or_None), matching
    PyTorch PatchEmbed.forward semantics.  `compute_dtype` is the MXU input
    dtype (accumulation is always f32; output dtype is x.dtype).
    """
    _, _, H, W = x.shape
    ph, pw = patch_size
    Hp, Wp = H // ph, W // pw

    tokens = _patch_embed_tokens(x, weight, bias, (ph, pw), compute_dtype)

    if mask is not None:
        mask = _nearest_resize_mask(mask, Hp, Wp)
    return tokens, (Hp, Wp), mask


class PatchEmbed:
    """JAX/Pallas mirror of the PyTorch PatchEmbed module."""

    def __init__(self, img_size=224, patch_size=16, in_chans=3, embed_dim=768,
                 *, key=None, dtype=jnp.float32, compute_dtype=jnp.bfloat16):
        img_size = _to_2tuple(img_size)
        patch_size = _to_2tuple(patch_size)
        self.img_size = img_size
        self.patch_size = patch_size
        self.patch_shape = (img_size[0] // patch_size[0],
                            img_size[1] // patch_size[1])
        self.num_patches = self.patch_shape[0] * self.patch_shape[1]
        self.in_chans = in_chans
        self.embed_dim = embed_dim
        self.compute_dtype = compute_dtype

        if key is None:
            key = jax.random.PRNGKey(0)
        kw, kb = jax.random.split(key)
        fan_in = in_chans * patch_size[0] * patch_size[1]
        bound = 1.0 / (fan_in ** 0.5)
        # Conv2d default init: U(-1/sqrt(fan_in), 1/sqrt(fan_in)).
        self.weight = jax.random.uniform(
            kw, (embed_dim, in_chans, patch_size[0], patch_size[1]),
            dtype=dtype, minval=-bound, maxval=bound)
        self.bias = jax.random.uniform(
            kb, (embed_dim,), dtype=dtype, minval=-bound, maxval=bound)

    def __call__(self, x, mask=None):
        return patch_embed_forward(x, self.weight, self.bias, self.patch_size,
                                   mask=mask, compute_dtype=self.compute_dtype)


if __name__ == "__main__":
    key = jax.random.PRNGKey(0)
    kx, kp, km = jax.random.split(key, 3)

    B, C, H, W = 2, 4, 16, 16
    patch = 4
    embed_dim = 128

    x = jax.random.normal(kx, (B, C, H, W), dtype=jnp.float32)
    mask = jax.random.bernoulli(km, 0.5, (B, H, W))

    module = PatchEmbed(img_size=(H, W), patch_size=patch, in_chans=C,
                        embed_dim=embed_dim, key=kp)

    tokens, (Hp, Wp), mask_out = module(x, mask=mask)
    tokens = jax.block_until_ready(tokens)

    # Reference: XLA strided convolution with the same bf16-in / f32-accumulate
    # numerics as the kernel (identical math to nn.Conv2d up to rounding).
    ref = jax.lax.conv_general_dilated(
        x.astype(jnp.bfloat16), module.weight.astype(jnp.bfloat16),
        window_strides=(patch, patch), padding="VALID",
        dimension_numbers=("NCHW", "OIHW", "NCHW"),
        preferred_element_type=jnp.float32)
    ref = ref + module.bias[None, :, None, None].astype(jnp.float32)
    ref = ref.reshape(B, embed_dim, Hp * Wp).transpose(0, 2, 1).astype(x.dtype)

    assert (Hp, Wp) == (H // patch, W // patch)
    assert tokens.shape == (B, Hp * Wp, embed_dim)
    assert tokens.dtype == x.dtype
    max_err = float(jnp.max(jnp.abs(tokens - ref)))
    assert jnp.allclose(tokens, ref, atol=2e-2, rtol=2e-2), max_err
    assert mask_out.shape == (B, Hp, Wp) and mask_out.dtype == jnp.bool_

    # mask=None path.
    tokens2, _, mask_none = module(x, mask=None)
    jax.block_until_ready(tokens2)
    assert mask_none is None
    assert jnp.allclose(tokens2, tokens)

    print("KERNEL_OK")
</pallas_src>

<mosaic_0001>
module attributes {stable_mosaic.version = 11 : i64} {
  func.func @_patch_embed_matmul_kernel(%arg0: i32, %arg1: i32, %arg2: memref<32x64xbf16, #tpu.memory_space<vmem>>, %arg3: memref<64x128xbf16, #tpu.memory_space<vmem>>, %arg4: memref<1x128xf32, #tpu.memory_space<vmem>>, %arg5: memref<32x128xf32, #tpu.memory_space<vmem>>) attributes {dimension_semantics = [#tpu.dimension_semantics<parallel>, #tpu.dimension_semantics<parallel>], iteration_bounds = array<i64: 1, 1>, scalar_prefetch = 0 : i64, scratch_operands = 0 : i64, tpu.core_type = #tpu.core_type<tc>, window_params = [{transform_indices = @transform_0, window_bounds = array<i64: 32, 64>}, {transform_indices = @transform_1, window_bounds = array<i64: 64, 128>}, {transform_indices = @transform_2, window_bounds = array<i64: 1, 128>}, {transform_indices = @transform_3, window_bounds = array<i64: 32, 128>}]} {
    %c0 = arith.constant 0 : index
    %c0_0 = arith.constant 0 : index
    %0 = vector.load %arg2[%c0, %c0_0] : memref<32x64xbf16, #tpu.memory_space<vmem>>, vector<32x64xbf16>
    %c0_1 = arith.constant 0 : index
    %c0_2 = arith.constant 0 : index
    %1 = vector.load %arg3[%c0_1, %c0_2] : memref<64x128xbf16, #tpu.memory_space<vmem>>, vector<64x128xbf16>
    %cst = arith.constant dense<0.000000e+00> : vector<32x128xf32>
    %2 = tpu.matmul %0, %1, %cst {dimension_numbers = #tpu.dot_dimension_numbers<[1], [0], [0], [1], [0, 0, 1, 1], [], []>} : vector<32x64xbf16>, vector<64x128xbf16>, vector<32x128xf32> -> vector<32x128xf32>
    %c0_3 = arith.constant 0 : index
    %c0_4 = arith.constant 0 : index
    %3 = vector.load %arg4[%c0_3, %c0_4] : memref<1x128xf32, #tpu.memory_space<vmem>>, vector<1x128xf32>
    %4 = vector.broadcast %3 : vector<1x128xf32> to vector<32x128xf32>
    %5 = arith.addf %2, %4 : vector<32x128xf32>
    %c0_5 = arith.constant 0 : index
    %c0_6 = arith.constant 0 : index
    %6 = vector.load %arg5[%c0_5, %c0_6] : memref<32x128xf32, #tpu.memory_space<vmem>>, vector<32x128xf32>
    tpu.vector_store %arg5[%c0_5, %c0_6], %5 {strides = array<i32>} : memref<32x128xf32, #tpu.memory_space<vmem>>, vector<32x128xf32>,
    return
  }
  func.func @transform_0(%arg0: i32, %arg1: i32) -> (i32, i32) {
    %c0_i32 = arith.constant 0 : i32
    %c0_i32_0 = arith.constant 0 : i32
    return %arg0, %c0_i32 : i32, i32
  }
  func.func @transform_1(%arg0: i32, %arg1: i32) -> (i32, i32) {
    %c0_i32 = arith.constant 0 : i32
    %c0_i32_0 = arith.constant 0 : i32
    return %c0_i32, %arg1 : i32, i32
  }
  func.func @transform_2(%arg0: i32, %arg1: i32) -> (i32, i32) {
    %c0_i32 = arith.constant 0 : i32
    %c0_i32_0 = arith.constant 0 : i32
    return %c0_i32, %arg1 : i32, i32
  }
  func.func @transform_3(%arg0: i32, %arg1: i32) -> (i32, i32) {
    %c0_i32 = arith.constant 0 : i32
    return %arg0, %arg1 : i32, i32
  }
}

</mosaic_0001>

<bundles_post_ra>
// kernel: _patch_embed_tokens.1
= control target key start
LH: loop header
LB: loop body
LE: loop exit
PB: predicated region body
PF: predicated region fallthrough
CT: control target
= control target key end

     0   :  { %vm69_vm0 = vcmask 523264   ;;  %s261_s0 = inlined_call_operand.vmem [shape: bf16[32,64], index: 0, kind: input, shape index: {}]   ;;  %s262_s1 = inlined_call_operand.vmem [shape: bf16[64,128], index: 1, kind: input, shape index: {}]   ;;  %s263_s2 = inlined_call_operand.vmem [shape: f32[1,128], index: 2, kind: input, shape index: {}]   ;;  %s264_s3 = inlined_call_operand.hbm [shape: f32[32,128], index: 3, kind: output, shape index: {}]  }
   0x1   :  { %v175_v0 = vld [vmem:[%s262_s1] sm:$0xff]   ;;  %v176_v1 = vld [vmem:[%s262_s1 + $0x8] sm:$0xff]   ;;  %v177_v2 = vld [vmem:[%s262_s1 + $0x10] sm:$0xff]  }
   0x2   :  { %160 = vmatprep.subr.bf16.mxu0 %v175_v0  ;;  %v179_v3 = vld [vmem:[%s261_s0] sm:$0xff]  }
   0x3   :  { %161 = vmatpush3.bf16.msra.mxu0 %v175_v0  ;;  %168 = vmatprep.mubr.msk.bf16.mxu0 %vm69_vm0, %v179_v3 }
   0x4   :  { %162 = vmatprep.subr.bf16.mxu0 %v176_v1 }
   0x5   :  { %8 = vsyncpa [#allocation3], 0  ;;  %v178_v4 = vld [vmem:[%s262_s1 + $0x18] sm:$0xff]   ;;  %v180_v5 = vld [vmem:[%s261_s0 + $0x8] sm:$0xff]   ;;  %s205_s26 = smov [#allocation2]  }
   0x6   :  { %v145_v6 = vld [vmem:[%s263_s2] ss:$0 sm:$0xff]  ;;  %s134_s27 = sshll.u32 %s205_s26, 4  ;;  %s135_s27 = int_to_ptr.vmem [resolvable:$true] %s134_s27 }
   0x7   :  { %163 = vmatpush3.bf16.msra.mxu0 %v176_v1  ;;  %s181_s0 = scalar_lea.vmem %s135_s27, 512  ;;  %p186_p1 = scmp.lt.s32.totalorder %s135_s27, %s135_s27 }
   0x8   :  { %164 = vmatprep.subr.bf16.mxu0 %v177_v2  ;;  %p182_p0 = scmp.ne.s32.totalorder %s135_s27, %s181_s0  ;;  %p187_p2 = scmp.lt.s32.totalorder %s181_s0, %s181_s0 }
   0xa   :  { %p188_p3 = por %p187_p2, %p186_p1 }
   0xb   :  { %165 = vmatpush3.bf16.msra.mxu0 %v177_v2 }
   0xc   :  { %166 = vmatprep.subr.bf16.mxu0 %v178_v4  ;;  %p189_p4 = pnand %p188_p3, %p182_p0 }
   0xf   :  { %167 = vmatpush3.bf16.msra.mxu0 %v178_v4 }
  0x12   :  { %169 = vmatmul.mubr.msk.bf16.vlgmr.msra.gmra.mrb[0].mxu0 %vm69_vm0, %v180_v5 }
  0xe5   :  { %v170_v7 = vpop.f32.mrb[0].mxu0 }
  0xe6   :  { %v119_v8 = vadd.f32 %v170_v7, %v145_v6  ;;  %v110_v9 = vpop.f32.mrb[1].mxu0 }
  0xe7   :  { %v111_v10 = vadd.f32 %v145_v6, %v110_v9  ;;  %v171_v11 = vpop.f32.mrb[2].mxu0 }
  0xe8   :  { %127 = vst [vmem:[#allocation2 + $0x10] sm:$0xff] %v119_v8  ;;  %v122_v12 = vadd.f32 %v171_v11, %v145_v6  ;;  %v113_v13 = vpop.f32.mrb[3].mxu0 }
  0xe9   :  { %125 = vst [vmem:[#allocation2] sm:$0xff] %v111_v10  ;;  %v114_v14 = vadd.f32 %v145_v6, %v113_v13 }
  0xea   :  { %128 = vst [vmem:[#allocation2 + $0x18] sm:$0xff] %v122_v12 }
  0xeb   :  { %126 = vst [vmem:[#allocation2 + $0x8] sm:$0xff] %v114_v14 }
  0xec   :  { %192 = shalt.err (!%p189_p4)
}
  0xed   :  { %s193_s28 = scalar_lea.hbm %s264_s3, 512 }
  0xee   :  { %p194_p5 = scmp.ne.s32.totalorder %s264_s3, %s193_s28  ;;  %p197_p6 = scmp.lt.u32.totalorder %s193_s28, %s264_s3 }
  0xf0   :  { %p199_p7 = pnand %p197_p6, %p194_p5 }
  0xf2   :  { %202 = shalt.err (!%p199_p7)
}
  0xf3   :  { %s206_s6 = smov 128   ;;  %s207_s7 = smov 8  }
  0xf4   :  { %140 = dma.vmem_to_hbm [thread:$0]  %s135_s27, 512, %s264_s3, [#allocation3], %s206_s6, %s206_s6, %s207_s7  }
  0xf5   :  { %203 = dma.done.wait [#allocation3], 512  }
  0xf6   :  { %204 = vsyncadd [#allocation3], 4294966784 }
  0xf7   :  { %144 = vsyncpa [#allocation3], 1 }

</bundles_post_ra>
